<compile_context>
chip_gen: v5e
topology: v5e:2x2
jax: 0.10.0
libtpu: 0.0.40
codegen_flags: <defaults>
</compile_context>

<pallas_src>
import functools

import jax
import jax.numpy as jnp
from jax import lax
from jax.experimental import pallas as pl
from jax.experimental.pallas import tpu as pltpu


def _round_up(x, m):
    return (x + m - 1) // m * m


def _brier_kernel(x_ref, t_ref, part_ref, *, n_total):
    """One grid step = one batch tile.

    x_ref:    (TB, C)   logits tile (any float dtype; cast to f32 in-kernel)
    t_ref:    (1, TB)   int32 labels tile (batch on lanes)
    part_ref: (1, 128)  per-tile partial sum (value in lane 0, zeros elsewhere)
    """
    i = pl.program_id(0)

    x = x_ref[...].astype(jnp.float32)              # (TB, C)
    tb, c = x.shape

    # Lane-dense layout: classes on sublanes, batch samples on lanes.
    xt = jnp.transpose(x)                           # (C, TB)

    # Softmax over the class (sublane) axis.
    m = jnp.max(xt, axis=0, keepdims=True)          # (1, TB)
    e = jnp.exp(xt - m)                             # (C, TB)
    s = jnp.sum(e, axis=0, keepdims=True)           # (1, TB)
    p = e * pl.reciprocal(s, approx=True)           # (C, TB)

    # One-hot(target) via sublane-iota comparison (no gather).
    t = t_ref[...]                                  # (1, TB) int32
    onehot = (t == lax.broadcasted_iota(jnp.int32, (c, tb), 0)).astype(jnp.float32)

    # Per-sample Brier score: sum over classes of squared error.
    d = p - onehot
    per_sample = jnp.sum(d * d, axis=0, keepdims=True)      # (1, TB)

    # Mask rows past the true batch size (last, possibly partial, tile).
    row = i * tb + lax.broadcasted_iota(jnp.int32, (1, tb), 1)
    per_sample = jnp.where(row < n_total, per_sample, 0.0)

    tile_sum = jnp.sum(per_sample, axis=1, keepdims=True)   # (1, 1)

    # Lane-dense partial-sum write: value in lane 0, zeros elsewhere, so the
    # wrapper can just jnp.sum the whole partials array.
    lane = lax.broadcasted_iota(jnp.int32, (1, 128), 1)
    part_ref[...] = jnp.where(lane == 0, tile_sum, 0.0)


def brier_loss(logits, target, *, num_classes=10, tile_b=2048, reduction="mean"):
    """Brier loss computed with a Pallas TPU kernel (reductions 'mean'/'sum')."""
    N, C = logits.shape
    assert C == num_classes

    # Sublane packing granularity for the logits dtype (f32=8, bf16=16, int8/fp8=32).
    itemsize = jnp.dtype(logits.dtype).itemsize
    pack = {1: 32, 2: 16}.get(itemsize, 8)

    if tile_b >= N:
        # Single tile covering the whole (padded) batch.
        tb = max(pack, _round_up(N, pack))
    else:
        # Multi-tile: keep the target block lane-aligned (multiple of 128).
        tb = _round_up(int(tile_b), max(pack, 128))

    num_tiles = pl.cdiv(N, tb)
    n_pad = num_tiles * tb

    # Targets laid out batch-on-lanes: (1, n_pad) int32, zero-padded.
    t2 = target.astype(jnp.int32).reshape(1, N)
    if n_pad != N:
        t2 = jnp.pad(t2, ((0, 0), (0, n_pad - N)))

    kernel = functools.partial(_brier_kernel, n_total=N)

    partials = pl.pallas_call(
        kernel,
        out_shape=jax.ShapeDtypeStruct((1, num_tiles * 128), jnp.float32),
        grid_spec=pltpu.PrefetchScalarGridSpec(
            num_scalar_prefetch=0,
            grid=(num_tiles,),
            in_specs=[
                pl.BlockSpec((tb, C), lambda i: (i, 0)),
                pl.BlockSpec((1, tb), lambda i: (0, i)),
            ],
            out_specs=pl.BlockSpec((1, 128), lambda i: (0, i)),
        ),
        compiler_params=pltpu.CompilerParams(
            # Each step owns its own output block -> fully parallel grid axis
            # (uses both TensorCores on v7x; harmless on v5e/v6e).
            dimension_semantics=("parallel",),
        ),
    )(logits, t2)

    total = jnp.sum(partials)  # tiny XLA reduce over num_tiles*128 elements
    if reduction == "mean":
        return total * jnp.float32(1.0 / N)
    elif reduction == "sum":
        return total
    else:
        # TODO(synk): reduction='none' (per-sample output) not implemented in-kernel.
        raise NotImplementedError("only reduction in ('mean', 'sum') is supported")


def _brier_loss_ref(logits, target, num_classes=10):
    p = jax.nn.softmax(logits.astype(jnp.float32), axis=-1)
    onehot = jax.nn.one_hot(target, num_classes, dtype=jnp.float32)
    per_row = jnp.sum((p - onehot) ** 2, axis=-1)
    return jnp.mean(per_row)


if __name__ == "__main__":
    key = jax.random.PRNGKey(0)
    k_x, k_t = jax.random.split(key)

    N, C = 16, 10
    logits = jax.random.normal(k_x, (N, C), dtype=jnp.float32)
    target = jax.random.randint(k_t, (N,), 0, C, dtype=jnp.int32)

    out = brier_loss(logits, target, num_classes=C)
    out = jax.block_until_ready(out)

    ref = _brier_loss_ref(logits, target, num_classes=C)
    # Tolerance accounts for the approximate (EUP) reciprocal in the softmax.
    assert jnp.allclose(out, ref, atol=1e-3, rtol=1e-3), (out, ref)

    print("KERNEL_OK")
</pallas_src>

<mosaic_0001>
module attributes {stable_mosaic.version = 11 : i64} {
  func.func @_brier_kernel(%arg0: i32, %arg1: memref<16x10xf32, #tpu.memory_space<vmem>>, %arg2: memref<1x16xi32, #tpu.memory_space<vmem>>, %arg3: memref<1x128xf32, #tpu.memory_space<vmem>>) attributes {dimension_semantics = [#tpu.dimension_semantics<parallel>], iteration_bounds = array<i64: 1>, scalar_prefetch = 0 : i64, scratch_operands = 0 : i64, tpu.core_type = #tpu.core_type<tc>, window_params = [{transform_indices = @transform_0, window_bounds = array<i64: 16, 10>}, {transform_indices = @transform_1, window_bounds = array<i64: 1, 16>}, {transform_indices = @transform_2, window_bounds = array<i64: 1, 128>}]} {
    %c0 = arith.constant 0 : index
    %c0_0 = arith.constant 0 : index
    %0 = vector.load %arg1[%c0, %c0_0] : memref<16x10xf32, #tpu.memory_space<vmem>>, vector<16x10xf32>
    %1 = tpu.transpose %0, [1, 0] : vector<16x10xf32> -> vector<10x16xf32>
    %cst = arith.constant dense<0xFF800000> : vector<16xf32>
    %2 = vector.multi_reduction <maximumf>, %1, %cst [0] : vector<10x16xf32> to vector<16xf32>
    %3 = vector.shape_cast %2 : vector<16xf32> to vector<1x16xf32>
    %4 = vector.broadcast %3 : vector<1x16xf32> to vector<10x16xf32>
    %5 = arith.subf %1, %4 : vector<10x16xf32>
    %6 = math.exp %5 : vector<10x16xf32>
    %cst_1 = arith.constant dense<0.000000e+00> : vector<16xf32>
    %7 = vector.multi_reduction <add>, %6, %cst_1 [0] : vector<10x16xf32> to vector<16xf32>
    %8 = vector.shape_cast %7 : vector<16xf32> to vector<1x16xf32>
    %9 = tpu.reciprocal %8 {approx = true} : vector<1x16xf32> -> vector<1x16xf32>
    %10 = vector.broadcast %9 : vector<1x16xf32> to vector<10x16xf32>
    %11 = arith.mulf %6, %10 : vector<10x16xf32>
    %c0_2 = arith.constant 0 : index
    %c0_3 = arith.constant 0 : index
    %12 = vector.load %arg2[%c0_2, %c0_3] : memref<1x16xi32, #tpu.memory_space<vmem>>, vector<1x16xi32>
    %13 = tpu.iota {dimensions = array<i32: 0>} : vector<10x16xi32>
    %14 = vector.broadcast %12 : vector<1x16xi32> to vector<10x16xi32>
    %15 = arith.cmpi eq, %14, %13 : vector<10x16xi32>
    %16 = arith.extui %15 : vector<10x16xi1> to vector<10x16xi32>
    %17 = arith.sitofp %16 : vector<10x16xi32> to vector<10x16xf32>
    %18 = arith.subf %11, %17 : vector<10x16xf32>
    %19 = arith.mulf %18, %18 : vector<10x16xf32>
    %cst_4 = arith.constant dense<0.000000e+00> : vector<16xf32>
    %20 = vector.multi_reduction <add>, %19, %cst_4 [0] : vector<10x16xf32> to vector<16xf32>
    %21 = vector.shape_cast %20 : vector<16xf32> to vector<1x16xf32>
    %c16_i32 = arith.constant 16 : i32
    %22 = arith.muli %arg0, %c16_i32 : i32
    %23 = tpu.iota {dimensions = array<i32: 1>} : vector<1x16xi32>
    %24 = vector.broadcast %22 : i32 to vector<1x16xi32>
    %25 = arith.addi %24, %23 : vector<1x16xi32>
    %c16_i32_5 = arith.constant 16 : i32
    %26 = vector.broadcast %c16_i32_5 : i32 to vector<1x16xi32>
    %27 = arith.cmpi slt, %25, %26 : vector<1x16xi32>
    %cst_6 = arith.constant 0.000000e+00 : f32
    %28 = vector.broadcast %cst_6 : f32 to vector<1x16xf32>
    %29 = arith.select %27, %21, %28 : vector<1x16xi1>, vector<1x16xf32>
    %cst_7 = arith.constant dense<0.000000e+00> : vector<1xf32>
    %30 = vector.multi_reduction <add>, %29, %cst_7 [1] : vector<1x16xf32> to vector<1xf32>
    %31 = vector.shape_cast %30 : vector<1xf32> to vector<1x1xf32>
    %32 = tpu.iota {dimensions = array<i32: 1>} : vector<1x128xi32>
    %c0_i32 = arith.constant 0 : i32
    %33 = vector.broadcast %c0_i32 : i32 to vector<1x128xi32>
    %34 = arith.cmpi eq, %32, %33 : vector<1x128xi32>
    %cst_8 = arith.constant 0.000000e+00 : f32
    %35 = vector.shape_cast %31 : vector<1x1xf32> to vector<1x1xf32>
    %36 = vector.broadcast %35 : vector<1x1xf32> to vector<1x128xf32>
    %37 = vector.broadcast %cst_8 : f32 to vector<1x128xf32>
    %38 = arith.select %34, %36, %37 : vector<1x128xi1>, vector<1x128xf32>
    %c0_9 = arith.constant 0 : index
    %c0_10 = arith.constant 0 : index
    %39 = vector.load %arg3[%c0_9, %c0_10] : memref<1x128xf32, #tpu.memory_space<vmem>>, vector<1x128xf32>
    tpu.vector_store %arg3[%c0_9, %c0_10], %38 {strides = array<i32>} : memref<1x128xf32, #tpu.memory_space<vmem>>, vector<1x128xf32>,
    return
  }
  func.func @transform_0(%arg0: i32) -> (i32, i32) {
    %c0_i32 = arith.constant 0 : i32
    %c0_i32_0 = arith.constant 0 : i32
    return %arg0, %c0_i32 : i32, i32
  }
  func.func @transform_1(%arg0: i32) -> (i32, i32) {
    %c0_i32 = arith.constant 0 : i32
    %c0_i32_0 = arith.constant 0 : i32
    return %c0_i32, %arg0 : i32, i32
  }
  func.func @transform_2(%arg0: i32) -> (i32, i32) {
    %c0_i32 = arith.constant 0 : i32
    %c0_i32_0 = arith.constant 0 : i32
    return %c0_i32, %arg0 : i32, i32
  }
}

</mosaic_0001>

<bundles_post_ra>
// kernel: tpu_custom_call.1
= control target key start
LH: loop header
LB: loop body
LE: loop exit
PB: predicated region body
PF: predicated region fallthrough
CT: control target
= control target key end

     0   :  { %7 = vsyncpa [#allocation3], 0  ;;  %s290_s0 = inlined_call_operand.hbm [shape: f32[16,10], index: 0, kind: input, shape index: {}]   ;;  %s291_s1 = inlined_call_operand.hbm [shape: s32[1,16], index: 1, kind: input, shape index: {}]   ;;  %s292_s2 = inlined_call_operand.hbm [shape: f32[1,128], index: 2, kind: output, shape index: {}]  }
   0x1   :  { %8 = vsyncpa [#allocation6], 0 }
   0x2   :  { %9 = vsyncpa [#allocation4], 0  ;;  %s14_s11 = sshll.u32 %s290_s0, 4  ;;  %s253_s12 = smov [#allocation2]   ;;  %s15_s11 = int_to_ptr.hbm [resolvable:$true] %s14_s11 }
   0x3   :  { %s16_s13 = sshll.u32 %s253_s12, 4  ;;  %s28_s16 = sshll.u32 %s291_s1, 4  ;;  %s17_s13 = int_to_ptr.vmem [resolvable:$true] %s16_s13  ;;  %s29_s16 = int_to_ptr.hbm [resolvable:$true] %s28_s16 }
   0x4   :  { %s254_s17 = smov 128   ;;  %s255_s18 = smov 8  }
   0x5   :  { %22 = dma.hbm_to_vmem [thread:$0]  %s15_s11, 256, %s17_s13, [#allocation3], %s254_s17, %s254_s17, %s255_s18  }
   0x6   :  { %s256_s19 = smov [#allocation5]  }
   0x7   :  { %s30_s20 = sshll.u32 %s256_s19, 4  ;;  %s31_s20 = int_to_ptr.vmem [resolvable:$true] %s30_s20 }
   0x8   :  { %33 = dma.hbm_to_vmem [thread:$0]  %s29_s16, 16, %s31_s20, [#allocation6]  }
   0x9   :  { %247 = dma.done.wait [#allocation3], 256  }
   0xa   :  { %248 = vsyncadd [#allocation3], 4294967040 }
   0xb   :  { %249 = dma.done.wait [#allocation6], 16  }
   0xc   :  { %250 = vsyncadd [#allocation6], 4294967280  ;;  %v42_v0 = vld [vmem:[#allocation2] sm:$0xff]  ;;  %v43_v1 = vld [vmem:[#allocation2 + $0x8] sm:$0xff]  ;;  %vm76_vm0 = vcmask 130048   ;;  %vm78_vm1 = vcmask 123904   ;;  %v106_v24 = vlaneseq }
   0xd   :  { %44 = vxpose.xlu0.b32.start [1/2] (short) (narrow) %v42_v0, 16  ;;  %v168_v31 = vld [vmem:[#allocation5] ss:$0 sm:$0xff]  ;;  %v257_v33 = vmov 0.0   ;;  %s258_s0 = smov [#allocation7]   ;;  %s149_s23 = sshll.u32 %s292_s2, 4  ;;  %s150_s23 = int_to_ptr.hbm [resolvable:$true] %s149_s23 }
   0xe   :  { %v107_v27 = vshrl.u32 %v106_v24, 7  ;;  %v131_v48 = vand.u32 127, %v106_v24  ;;  %s147_s1 = sshll.u32 %s258_s0, 4  ;;  %s148_s1 = int_to_ptr.vmem [resolvable:$true] %s147_s1 }
  0x10   :  { %v108_v30 = vadd.s32 8, %v107_v27  ;;  %vm110_vm2 = vcmp.eq.s32.totalorder %v168_v31, %v107_v27  ;;  %vm134_vm4 = vcmp.lt.s32.totalorder %v131_v48, 16  ;;  %vm139_vm5 = vcmp.eq.s32.totalorder %v131_v48, 0 }
  0x11   :  { %v160_v34 = vsel %vm110_vm2, 1.0, %v257_v33 }
  0x12   :  { %vm111_vm3 = vcmp.eq.s32.totalorder %v168_v31, %v108_v30 }
  0x13   :  { %v161_v35 = vsel %vm111_vm3, 1.0, %v257_v33 }
  0x15   :  { %45 = vxpose.xlu0.b32.end [2/2] (short) (narrow) %v43_v1, 16 }
  0xb1   :  { %v60_v2 = vpop.trf.xlu0 }
  0xb2   :  { %v77_v4 = vsel %vm76_vm0, %v60_v2, -inf }
  0xb9   :  { %v61_v3 = vpop.trf.xlu0 }
  0xba   :  { %v79_v5 = vsel %vm78_vm1, %v61_v3, -inf }
  0xbb   :  { %v80_v6 = vmax.f32 %v77_v4, %v79_v5 }
  0xbd   :  { %v81_v7 = vrot.slane %v80_v6, 4 }
  0xbf   :  { %v82_v8 = vmax.f32 %v80_v6, %v81_v7 }
  0xc1   :  { %v83_v9 = vrot.slane %v82_v8, 2 }
  0xc3   :  { %v84_v10 = vmax.f32 %v82_v8, %v83_v9 }
  0xc5   :  { %v85_v11 = vrot.slane %v84_v10, 1 }
  0xc7   :  { %v86_v12 = vmax.f32 %v84_v10, %v85_v11 }
  0xc9   :  { %v87_v13 = vsub.f32 %v60_v2, %v86_v12  ;;  %v88_v14 = vsub.f32 %v61_v3, %v86_v12 }
  0xcb   :  { %v89_v15 = vmul.f32 1.442695, %v87_v13  ;;  %v91_v16 = vmul.f32 1.442695, %v88_v14 }
  0xcd   :  { %169 = vpow2.f32 %v89_v15 }
  0xce   :  { %171 = vpow2.f32 %v91_v16 }
  0xd3   :  { %v170_v17 = vpop.eup %169 }
  0xd4   :  { %v172_v18 = vpop.eup %171  ;;  %v93_v19 = vsel %vm76_vm0, %v170_v17, 0.0 }
  0xd5   :  { %v94_v20 = vsel %vm78_vm1, %v172_v18, 0.0 }
  0xd6   :  { %v95_v21 = vadd.f32 %v94_v20, %v93_v19 }
  0xd8   :  { %v96_v22 = vrot.slane %v95_v21, 4 }
  0xda   :  { %v97_v23 = vadd.f32 %v96_v22, %v95_v21 }
  0xdc   :  { %v98_v25 = vrot.slane %v97_v23, 2 }
  0xde   :  { %v99_v26 = vadd.f32 %v98_v25, %v97_v23 }
  0xe0   :  { %v100_v28 = vrot.slane %v99_v26, 1 }
  0xe2   :  { %v101_v29 = vadd.f32 %v100_v28, %v99_v26 }
  0xe4   :  { %173 = vrcp.f32 %v101_v29 }
  0xea   :  { %v174_v32 = vpop.eup %173 }
  0xeb   :  { %v103_v36 = vmul.f32 %v174_v32, %v170_v17  ;;  %v104_v37 = vmul.f32 %v174_v32, %v172_v18 }
  0xed   :  { %v116_v38 = vsub.f32 %v103_v36, %v160_v34  ;;  %v117_v39 = vsub.f32 %v104_v37, %v161_v35 }
  0xef   :  { %v118_v40 = vmul.f32 %v116_v38, %v116_v38  ;;  %v119_v41 = vmul.f32 %v117_v39, %v117_v39 }
  0xf1   :  { %v120_v42 = vsel %vm76_vm0, %v118_v40, 0.0  ;;  %v121_v43 = vsel %vm78_vm1, %v119_v41, 0.0 }
  0xf2   :  { %v122_v44 = vadd.f32 %v121_v43, %v120_v42 }
  0xf4   :  { %v123_v45 = vrot.slane %v122_v44, 4 }
  0xf6   :  { %v124_v46 = vadd.f32 %v123_v45, %v122_v44 }
  0xf8   :  { %v125_v47 = vrot.slane %v124_v46, 2 }
  0xfa   :  { %v126_v49 = vadd.f32 %v125_v47, %v124_v46 }
  0xfc   :  { %v127_v50 = vrot.slane %v126_v49, 1 }
  0xfe   :  { %v128_v51 = vadd.f32 %v127_v50, %v126_v49 }
 0x100   :  { %v135_v52 = vsel %vm134_vm4, %v128_v51, 0.0 }
 0x101   :  { %v136_v53 = vsel %vm76_vm0, %v135_v52, 0.0 }
 0x102   :  { %137 = vadd.xlane.f32.xlu1 %v136_v53 }
 0x175   :  { %v138_v54 = vpop.xlane.xlu1 %137 }
 0x176   :  { %v140_v55 = vsel %vm139_vm5, %v138_v54, 0.0 }
 0x177   :  { %141 = vst [vmem:[#allocation7] sm:$0x1] %v140_v55 }
 0x178   :  { %152 = dma.vmem_to_hbm [thread:$0]  %s148_s1, 16, %s150_s23, [#allocation4]  }
 0x179   :  { %251 = dma.done.wait [#allocation4], 16  }
 0x17a   :  { %252 = vsyncadd [#allocation4], 4294967280 }
 0x17b   :  { %157 = vsyncpa [#allocation3], 1 }
 0x17c   :  { %158 = vsyncpa [#allocation6], 1 }
 0x17d   :  { %159 = vsyncpa [#allocation4], 1 }

</bundles_post_ra>
